<compile_context>
chip_gen: v7x
topology: tpu7x:2x2x1
jax: 0.10.0
libtpu: 0.0.40
codegen_flags: <defaults>
</compile_context>

<pallas_src>
import jax
import jax.numpy as jnp
from jax.experimental import pallas as pl
from jax.experimental.pallas import tpu as pltpu

GAMMA = 2.0
ALPHA = 0.25
IGNORE_INDEX = 255


def _round_up(x, m):
    return ((x + m - 1) // m) * m


def _cdiv(a, b):
    return -(-a // b)


def _vmem_budget_bytes():
    """(combined kernel-buffer budget, vmem_limit_bytes) per TPU generation."""
    kind = ""
    try:
        kind = jax.devices()[0].device_kind.lower()
    except Exception:
        pass
    if "v5 lite" in kind or "v5e" in kind or "v5lite" in kind:
        # 128 MiB physical VMEM, 16 MiB default scoped; ~820 GB/s HBM.
        return 12 << 20, 24 << 20
    if "v6" in kind:
        # 128 MiB physical VMEM, 32 MiB default scoped; ~1.4 TB/s HBM.
        return 28 << 20, 48 << 20
    # v7x has only 64 MiB physical VMEM per TensorCore; also the safe default
    # for unknown generations.
    return 20 << 20, 32 << 20


def focal_loss(logits_nchw, target_nhw, tile_pixels=None):
    """Focal loss matching FocalLoss(gamma=2, alpha=0.25, ignore_index=255).forward."""
    N, C, H, W = logits_nchw.shape
    P = H * W

    # NCHW viewed as (N, C, P); targets as (N, 1, P).  Pure metadata reshapes —
    # no transpose, no pad, no extra HBM traffic in the wrapper.
    x = logits_nchw.reshape(N, C, P)
    t = target_nhw.reshape(N, 1, P).astype(jnp.int32)

    # ---- generation-aware tile sizing --------------------------------------
    budget, vmem_limit = _vmem_budget_bytes()
    itemsize = jnp.dtype(x.dtype).itemsize
    sublane = max(8, 8 * (4 // max(1, itemsize)))   # 8 (f32) / 16 (bf16) / 32 (int8)
    c_pad = _round_up(C, sublane)                   # VMEM tiles pad C to the sublane tile
    # VMEM bytes actually consumed per pixel column:
    #   logits double-buffer       : 2 * c_pad * itemsize
    #   int32 targets double-buffer: 2 * 8 * 4   ((1, tile) row padded to 8 sublanes)
    #   f32 accumulators (sum, cnt): 2 * 8 * 4
    bytes_per_col = 2 * c_pad * itemsize + 2 * 8 * 4 + 2 * 8 * 4
    tile_p = (budget // bytes_per_col) // 128 * 128
    if tile_pixels is not None:
        tile_p = min(tile_p, _round_up(tile_pixels, 128))
    tile_p = max(128, min(tile_p, _round_up(P, 128)))

    # ---- grid: (core-split, image, pixel-tile) ------------------------------
    total_tiles = _cdiv(P, tile_p)
    num_splits = 2 if total_tiles > 1 else 1        # feed both v7x TensorCores
    tiles_per_split = _cdiv(total_tiles, num_splits)
    last_block = total_tiles - 1

    def block_idx(c, p):
        # Clamp so no DMA ever starts past the end of the pixel axis; the clamped
        # duplicate tile and the ragged tail are zeroed by the in-kernel mask.
        return jnp.minimum(c * tiles_per_split + p, last_block)

    # NOTE(perf): for C < 8 (f32) a pixel-dense (C, 8k, 128) layout would avoid the
    # sublane padding waste; skipped here since the kernel stays memory-bound.
    def kernel(x_ref, t_ref, out_ref, sum_acc, cnt_acc):
        c = pl.program_id(0)          # core-split index
        p = pl.program_id(2)          # pixel-tile step (reduction axis)
        n_p = pl.num_programs(2)

        @pl.when(p == 0)
        def _():
            sum_acc[...] = jnp.zeros_like(sum_acc)
            cnt_acc[...] = jnp.zeros_like(cnt_acc)

        xv = x_ref[...].astype(jnp.float32)   # (C, TILE_P)
        tv = t_ref[...]                        # (1, TILE_P) int32

        # Positional mask: kills the ragged tail of the last tile and the clamped
        # duplicate tile of the second core split (their lanes hold garbage).
        lane = jax.lax.broadcasted_iota(jnp.int32, (1, tile_p), 1)
        global_pix = (c * n_p + p) * tile_p + lane
        valid = (global_pix < P) & (tv != IGNORE_INDEX)           # (1, TILE_P)

        # Numerically-stable log-sum-exp over the (small) class/sublane axis.
        m = jnp.max(xv, axis=0, keepdims=True)                                 # (1,T)
        lse = m + jnp.log(jnp.sum(jnp.exp(xv - m), axis=0, keepdims=True))     # (1,T)

        # Gather the target-class logit via one-hot compare; the full log-softmax
        # tensor is never materialized.
        class_ids = jax.lax.broadcasted_iota(jnp.int32, xv.shape, 0)           # (C,T)
        x_sel = jnp.sum(jnp.where(class_ids == tv, xv, 0.0),
                        axis=0, keepdims=True)                                 # (1,T)
        neg_logp = lse - x_sel                                                 # (1,T)

        # Pure per-lane VPU accumulation; single cross-lane reduce in the epilogue.
        sum_acc[...] += jnp.where(valid, neg_logp, 0.0)
        cnt_acc[...] += valid.astype(jnp.float32)

        @pl.when(p == n_p - 1)
        def _():
            s = jnp.sum(sum_acc[...])
            cnt = jnp.sum(cnt_acc[...])
            rows = jax.lax.broadcasted_iota(jnp.int32, (8, 128), 0)
            # Row 0 = -logp sum, row 1 = valid-pixel count, rest zero.
            out_ref[...] = jnp.where(rows == 0, s, jnp.where(rows == 1, cnt, 0.0))

    out_bytes = num_splits * N * 8 * 128 * 4
    cost = pl.CostEstimate(
        flops=int(N * P * (6 * C + 8)),
        transcendentals=int(N * P * (C + 1)),
        bytes_accessed=int(N * C * P * itemsize + N * P * 4 + out_bytes),
    )

    partials = pl.pallas_call(
        kernel,
        out_shape=jax.ShapeDtypeStruct((num_splits, N, 8, 128), jnp.float32),
        grid_spec=pltpu.PrefetchScalarGridSpec(
            num_scalar_prefetch=0,
            grid=(num_splits, N, tiles_per_split),
            in_specs=[
                # (None, C, TILE_P): squeeze batch dim -> kernel sees (C, TILE_P)
                pl.BlockSpec((None, C, tile_p),
                             lambda c, n, p: (n, 0, block_idx(c, p))),
                pl.BlockSpec((None, 1, tile_p),
                             lambda c, n, p: (n, 0, block_idx(c, p))),
            ],
            out_specs=pl.BlockSpec((None, None, 8, 128),
                                   lambda c, n, p: (c, n, 0, 0)),
            scratch_shapes=[
                pltpu.VMEM((1, tile_p), jnp.float32),  # per-lane -logp partials
                pltpu.VMEM((1, tile_p), jnp.float32),  # per-lane valid counts
            ],
        ),
        compiler_params=pltpu.CompilerParams(
            # core-split + batch parallel (2 TCs on v7x; no-op on v5e/v6e),
            # pixel-reduction axis arbitrary (carried accumulators).
            dimension_semantics=("parallel", "parallel", "arbitrary"),
            vmem_limit_bytes=vmem_limit),
        cost_estimate=cost,
    )(x, t)

    # Tiny scalar epilogue (mean CE + focal transform) outside the kernel.
    total_sum = jnp.sum(partials[:, :, 0, 0])
    total_cnt = jnp.sum(partials[:, :, 1, 0])   # NaN if every pixel ignored — matches ref.
    ce = total_sum / total_cnt
    logpt = -ce
    pt = jnp.exp(logpt)
    loss = -((1.0 - pt) ** GAMMA) * logpt
    return loss * ALPHA                          # alpha > 0 branch of the module


def focal_loss_ref(logits_nchw, target_nhw):
    """Pure-JAX reference matching nn.CrossEntropyLoss(ignore_index=255) + focal scaling."""
    N, C, H, W = logits_nchw.shape
    x = jnp.transpose(logits_nchw, (0, 2, 3, 1)).reshape(-1, C).astype(jnp.float32)
    t = target_nhw.reshape(-1).astype(jnp.int32)
    logp = jax.nn.log_softmax(x, axis=-1)
    valid = t != IGNORE_INDEX
    t_safe = jnp.where(valid, t, 0)
    nll = -jnp.take_along_axis(logp, t_safe[:, None], axis=-1)[:, 0]
    ce = jnp.sum(jnp.where(valid, nll, 0.0)) / jnp.sum(valid.astype(jnp.float32))
    logpt = -ce
    pt = jnp.exp(logpt)
    return -((1.0 - pt) ** GAMMA) * logpt * ALPHA


if __name__ == "__main__":
    key = jax.random.PRNGKey(0)
    k1, k2, k3 = jax.random.split(key, 3)

    # Case 1: the module-sized example (auto tile covers all pixels in one step).
    N, C, H, W = 2, 4, 16, 16
    logits = jax.random.normal(k1, (N, C, H, W), dtype=jnp.float32)
    target = jax.random.randint(k2, (N, H, W), 0, C, dtype=jnp.int32)
    ignore_mask = jax.random.bernoulli(k3, p=0.1, shape=(N, H, W))
    target = jnp.where(ignore_mask, IGNORE_INDEX, target)

    out = jax.block_until_ready(focal_loss(logits, target))
    ref = jax.block_until_ready(focal_loss_ref(logits, target))
    assert jnp.allclose(out, ref, rtol=1e-4, atol=1e-6), (out, ref)

    # Case 2: ragged pixel count + forced small tile — exercises the in-kernel
    # positional mask and the 2-way core-split path.
    H2, W2 = 15, 15
    logits2 = jax.random.normal(k1, (N, C, H2, W2), dtype=jnp.float32)
    target2 = jax.random.randint(k2, (N, H2, W2), 0, C, dtype=jnp.int32)
    ignore2 = jax.random.bernoulli(k3, p=0.1, shape=(N, H2, W2))
    target2 = jnp.where(ignore2, IGNORE_INDEX, target2)

    out2 = jax.block_until_ready(focal_loss(logits2, target2, tile_pixels=128))
    ref2 = jax.block_until_ready(focal_loss_ref(logits2, target2))
    assert jnp.allclose(out2, ref2, rtol=1e-4, atol=1e-6), (out2, ref2)

    print("KERNEL_OK")
</pallas_src>

<mosaic_0001>
module attributes {stable_mosaic.version = 11 : i64} {
  func.func @kernel(%arg0: i32, %arg1: i32, %arg2: i32, %arg3: memref<1x4x256xf32, #tpu.memory_space<vmem>>, %arg4: memref<1x1x256xi32, #tpu.memory_space<vmem>>, %arg5: memref<1x1x8x128xf32, #tpu.memory_space<vmem>>, %arg6: memref<1x256xf32, #tpu.memory_space<vmem>>, %arg7: memref<1x256xf32, #tpu.memory_space<vmem>>) attributes {dimension_semantics = [#tpu.dimension_semantics<parallel>, #tpu.dimension_semantics<parallel>, #tpu.dimension_semantics<arbitrary>], iteration_bounds = array<i64: 1, 2, 1>, scalar_prefetch = 0 : i64, scratch_operands = 2 : i64, tpu.core_type = #tpu.core_type<tc>, window_params = [{transform_indices = @transform_0, window_bounds = array<i64: 1, 4, 256>}, {transform_indices = @transform_1, window_bounds = array<i64: 1, 1, 256>}, {transform_indices = @transform_2, window_bounds = array<i64: 1, 1, 8, 128>}]} {
    %c0_i32 = arith.constant 0 : i32
    %0 = arith.cmpi eq, %arg2, %c0_i32 : i32
    %1 = arith.extui %0 : i1 to i32
    %c0_i32_0 = arith.constant 0 : i32
    %2 = arith.cmpi ne, %1, %c0_i32_0 : i32
    scf.if %2 {
      %cst_21 = arith.constant 0.000000e+00 : f32
      %48 = vector.broadcast %cst_21 : f32 to vector<1x256xf32>
      %c0_22 = arith.constant 0 : index
      %c0_23 = arith.constant 0 : index
      %49 = vector.load %arg6[%c0_22, %c0_23] : memref<1x256xf32, #tpu.memory_space<vmem>>, vector<1x256xf32>
      tpu.vector_store %arg6[%c0_22, %c0_23], %48 {strides = array<i32>} : memref<1x256xf32, #tpu.memory_space<vmem>>, vector<1x256xf32>,
      %cst_24 = arith.constant 0.000000e+00 : f32
      %50 = vector.broadcast %cst_24 : f32 to vector<1x256xf32>
      %c0_25 = arith.constant 0 : index
      %c0_26 = arith.constant 0 : index
      %51 = vector.load %arg7[%c0_25, %c0_26] : memref<1x256xf32, #tpu.memory_space<vmem>>, vector<1x256xf32>
      tpu.vector_store %arg7[%c0_25, %c0_26], %50 {strides = array<i32>} : memref<1x256xf32, #tpu.memory_space<vmem>>, vector<1x256xf32>,
    } else {
    }
    %c0 = arith.constant 0 : index
    %c0_1 = arith.constant 0 : index
    %c0_2 = arith.constant 0 : index
    %3 = vector.load %arg3[%c0, %c0_1, %c0_2] : memref<1x4x256xf32, #tpu.memory_space<vmem>>, vector<1x4x256xf32>
    %4 = vector.shape_cast %3 : vector<1x4x256xf32> to vector<4x256xf32>
    %c0_3 = arith.constant 0 : index
    %c0_4 = arith.constant 0 : index
    %c0_5 = arith.constant 0 : index
    %5 = vector.load %arg4[%c0_3, %c0_4, %c0_5] : memref<1x1x256xi32, #tpu.memory_space<vmem>>, vector<1x1x256xi32>
    %6 = vector.shape_cast %5 : vector<1x1x256xi32> to vector<1x256xi32>
    %7 = tpu.iota {dimensions = array<i32: 1>} : vector<1x256xi32>
    %c1_i32 = arith.constant 1 : i32
    %8 = arith.muli %arg0, %c1_i32 : i32
    %9 = arith.addi %8, %arg2 : i32
    %c256_i32 = arith.constant 256 : i32
    %10 = arith.muli %9, %c256_i32 : i32
    %11 = vector.broadcast %10 : i32 to vector<1x256xi32>
    %12 = arith.addi %11, %7 : vector<1x256xi32>
    %c256_i32_6 = arith.constant 256 : i32
    %13 = vector.broadcast %c256_i32_6 : i32 to vector<1x256xi32>
    %14 = arith.cmpi slt, %12, %13 : vector<1x256xi32>
    %c255_i32 = arith.constant 255 : i32
    %15 = vector.broadcast %c255_i32 : i32 to vector<1x256xi32>
    %16 = arith.cmpi ne, %6, %15 : vector<1x256xi32>
    %17 = arith.andi %14, %16 : vector<1x256xi1>
    %cst = arith.constant dense<0xFF800000> : vector<256xf32>
    %18 = vector.multi_reduction <maximumf>, %4, %cst [0] : vector<4x256xf32> to vector<256xf32>
    %19 = vector.shape_cast %18 : vector<256xf32> to vector<1x256xf32>
    %20 = vector.broadcast %19 : vector<1x256xf32> to vector<4x256xf32>
    %21 = arith.subf %4, %20 : vector<4x256xf32>
    %22 = math.exp %21 : vector<4x256xf32>
    %cst_7 = arith.constant dense<0.000000e+00> : vector<256xf32>
    %23 = vector.multi_reduction <add>, %22, %cst_7 [0] : vector<4x256xf32> to vector<256xf32>
    %24 = vector.shape_cast %23 : vector<256xf32> to vector<1x256xf32>
    %25 = math.log %24 : vector<1x256xf32>
    %26 = arith.addf %19, %25 : vector<1x256xf32>
    %27 = tpu.iota {dimensions = array<i32: 0>} : vector<4x256xi32>
    %28 = vector.broadcast %6 : vector<1x256xi32> to vector<4x256xi32>
    %29 = arith.cmpi eq, %27, %28 : vector<4x256xi32>
    %cst_8 = arith.constant 0.000000e+00 : f32
    %30 = vector.broadcast %cst_8 : f32 to vector<4x256xf32>
    %31 = arith.select %29, %4, %30 : vector<4x256xi1>, vector<4x256xf32>
    %cst_9 = arith.constant dense<0.000000e+00> : vector<256xf32>
    %32 = vector.multi_reduction <add>, %31, %cst_9 [0] : vector<4x256xf32> to vector<256xf32>
    %33 = vector.shape_cast %32 : vector<256xf32> to vector<1x256xf32>
    %34 = arith.subf %26, %33 : vector<1x256xf32>
    %c0_10 = arith.constant 0 : index
    %c0_11 = arith.constant 0 : index
    %35 = vector.load %arg6[%c0_10, %c0_11] : memref<1x256xf32, #tpu.memory_space<vmem>>, vector<1x256xf32>
    %cst_12 = arith.constant 0.000000e+00 : f32
    %36 = vector.broadcast %cst_12 : f32 to vector<1x256xf32>
    %37 = arith.select %17, %34, %36 : vector<1x256xi1>, vector<1x256xf32>
    %38 = arith.addf %35, %37 : vector<1x256xf32>
    %c0_13 = arith.constant 0 : index
    %c0_14 = arith.constant 0 : index
    %39 = vector.load %arg6[%c0_13, %c0_14] : memref<1x256xf32, #tpu.memory_space<vmem>>, vector<1x256xf32>
    tpu.vector_store %arg6[%c0_13, %c0_14], %38 {strides = array<i32>} : memref<1x256xf32, #tpu.memory_space<vmem>>, vector<1x256xf32>,
    %c0_15 = arith.constant 0 : index
    %c0_16 = arith.constant 0 : index
    %40 = vector.load %arg7[%c0_15, %c0_16] : memref<1x256xf32, #tpu.memory_space<vmem>>, vector<1x256xf32>
    %41 = arith.extui %17 : vector<1x256xi1> to vector<1x256xi32>
    %42 = arith.sitofp %41 : vector<1x256xi32> to vector<1x256xf32>
    %43 = arith.addf %40, %42 : vector<1x256xf32>
    %c0_17 = arith.constant 0 : index
    %c0_18 = arith.constant 0 : index
    %44 = vector.load %arg7[%c0_17, %c0_18] : memref<1x256xf32, #tpu.memory_space<vmem>>, vector<1x256xf32>
    tpu.vector_store %arg7[%c0_17, %c0_18], %43 {strides = array<i32>} : memref<1x256xf32, #tpu.memory_space<vmem>>, vector<1x256xf32>,
    %c0_i32_19 = arith.constant 0 : i32
    %45 = arith.cmpi eq, %arg2, %c0_i32_19 : i32
    %46 = arith.extui %45 : i1 to i32
    %c0_i32_20 = arith.constant 0 : i32
    %47 = arith.cmpi ne, %46, %c0_i32_20 : i32
    scf.if %47 {
      %c0_21 = arith.constant 0 : index
      %c0_22 = arith.constant 0 : index
      %48 = vector.load %arg6[%c0_21, %c0_22] : memref<1x256xf32, #tpu.memory_space<vmem>>, vector<1x256xf32>
      %49 = vector.shape_cast %48 : vector<1x256xf32> to vector<1x1x256xf32>
      %cst_23 = arith.constant dense<0.000000e+00> : vector<1xf32>
      %50 = vector.multi_reduction <add>, %49, %cst_23 [1, 2] : vector<1x1x256xf32> to vector<1xf32>
      %51 = vector.shape_cast %50 : vector<1xf32> to vector<1x1x1xf32>
      %52 = vector.extract %51[0, 0, 0] : f32 from vector<1x1x1xf32>
      %c0_24 = arith.constant 0 : index
      %c0_25 = arith.constant 0 : index
      %53 = vector.load %arg7[%c0_24, %c0_25] : memref<1x256xf32, #tpu.memory_space<vmem>>, vector<1x256xf32>
      %54 = vector.shape_cast %53 : vector<1x256xf32> to vector<1x1x256xf32>
      %cst_26 = arith.constant dense<0.000000e+00> : vector<1xf32>
      %55 = vector.multi_reduction <add>, %54, %cst_26 [1, 2] : vector<1x1x256xf32> to vector<1xf32>
      %56 = vector.shape_cast %55 : vector<1xf32> to vector<1x1x1xf32>
      %57 = vector.extract %56[0, 0, 0] : f32 from vector<1x1x1xf32>
      %58 = tpu.iota {dimensions = array<i32: 0>} : vector<8x128xi32>
      %c0_i32_27 = arith.constant 0 : i32
      %59 = vector.broadcast %c0_i32_27 : i32 to vector<8x128xi32>
      %60 = arith.cmpi eq, %58, %59 : vector<8x128xi32>
      %c1_i32_28 = arith.constant 1 : i32
      %61 = vector.broadcast %c1_i32_28 : i32 to vector<8x128xi32>
      %62 = arith.cmpi eq, %58, %61 : vector<8x128xi32>
      %cst_29 = arith.constant 0.000000e+00 : f32
      %63 = vector.broadcast %57 : f32 to vector<8x128xf32>
      %64 = vector.broadcast %cst_29 : f32 to vector<8x128xf32>
      %65 = arith.select %62, %63, %64 : vector<8x128xi1>, vector<8x128xf32>
      %66 = vector.broadcast %52 : f32 to vector<8x128xf32>
      %67 = arith.select %60, %66, %65 : vector<8x128xi1>, vector<8x128xf32>
      %c0_30 = arith.constant 0 : index
      %c0_31 = arith.constant 0 : index
      %c0_32 = arith.constant 0 : index
      %c0_33 = arith.constant 0 : index
      %68 = vector.load %arg5[%c0_30, %c0_31, %c0_32, %c0_33] : memref<1x1x8x128xf32, #tpu.memory_space<vmem>>, vector<1x1x8x128xf32>
      %69 = vector.shape_cast %68 : vector<1x1x8x128xf32> to vector<8x128xf32>
      %70 = vector.shape_cast %67 : vector<8x128xf32> to vector<1x1x8x128xf32>
      tpu.vector_store %arg5[%c0_30, %c0_31, %c0_32, %c0_33], %70 {strides = array<i32>} : memref<1x1x8x128xf32, #tpu.memory_space<vmem>>, vector<1x1x8x128xf32>,
    } else {
    }
    return
  }
  func.func @transform_0(%arg0: i32, %arg1: i32, %arg2: i32) -> (i32, i32, i32) {
    %c1_i32 = arith.constant 1 : i32
    %0 = arith.muli %arg0, %c1_i32 : i32
    %1 = arith.addi %0, %arg2 : i32
    %c0_i32 = arith.constant 0 : i32
    %2 = arith.minsi %1, %c0_i32 : i32
    %c0_i32_0 = arith.constant 0 : i32
    %c0_i32_1 = arith.constant 0 : i32
    return %arg1, %c0_i32_0, %2 : i32, i32, i32
  }
  func.func @transform_1(%arg0: i32, %arg1: i32, %arg2: i32) -> (i32, i32, i32) {
    %c1_i32 = arith.constant 1 : i32
    %0 = arith.muli %arg0, %c1_i32 : i32
    %1 = arith.addi %0, %arg2 : i32
    %c0_i32 = arith.constant 0 : i32
    %2 = arith.minsi %1, %c0_i32 : i32
    %c0_i32_0 = arith.constant 0 : i32
    %c0_i32_1 = arith.constant 0 : i32
    return %arg1, %c0_i32_0, %2 : i32, i32, i32
  }
  func.func @transform_2(%arg0: i32, %arg1: i32, %arg2: i32) -> (i32, i32, i32, i32) {
    %c0_i32 = arith.constant 0 : i32
    %c0_i32_0 = arith.constant 0 : i32
    %c0_i32_1 = arith.constant 0 : i32
    return %arg0, %arg1, %c0_i32, %c0_i32_0 : i32, i32, i32, i32
  }
}

</mosaic_0001>

<bundles_post_ra>
// kernel: tpu_custom_call.1
= control target key start
LH: loop header
LB: loop body
LE: loop exit
PB: predicated region body
PF: predicated region fallthrough
CT: control target
= control target key end

     0   :  { %7 = vsyncpa [#allocation5], 0  ;;  %s1158_s0 = inlined_call_operand.hbm [shape: f32[2,4,256], index: 0, kind: input, shape index: {}]   ;;  %s1159_s1 = inlined_call_operand.hbm [shape: s32[2,1,256], index: 1, kind: input, shape index: {}]   ;;  %s1160_s2 = inlined_call_operand.hbm [shape: f32[1,2,8,128], index: 2, kind: output, shape index: {}]  }
   0x1   :  { %9 = vsyncpa [#allocation5 + $0x1], 0 }
   0x2   :  { %10 = vsyncpa [#allocation8], 0 }
   0x3   :  { %12 = vsyncpa [#allocation8 + $0x1], 0 }
   0x4   :  { %13 = vsyncpa [#allocation6], 0 }
   0x5   :  { %15 = vsyncpa [#allocation6 + $0x1], 0  ;;  %s878_s9 = smov 0   ;;  %s880_s10 = smov 0  }
   0x6   :  { %s882_s11 = smov 0   ;;  %s884_s12 = smov 0  }
   0x7   :  { %s886_s13 = smov 0   ;;  %s888_s14 = smov 0  }
   0x8 LB: > { %s606_s15 = sadd.s32 4294967295, %s855_s14   ;;  %s607_s16 = sadd.s32 4294967294, %s855_s14   ;;  %s855_s14 = sphi %s888_s14, %s21_s14   ;;  %s851_s13 = sphi %s886_s13, %s1186_s13   ;;  %s847_s12 = sphi %s884_s12, %s1185_s12   ;;  %s843_s11 = sphi %s882_s11, %s1184_s11   ;;  %s839_s10 = sphi %s880_s10, %s1183_s10   ;;  %s835_s9 = sphi %s878_s9, %s1182_s9  }
   0x9   : > { %s36_s17 = sadd.s32 1, %s851_s13  ;;  %s55_s18 = sadd.s32 1, %s843_s11 }
   0xa   : > { %p38_p0 = scmp.ge.s32.totalorder %s36_s17, 2  ;;  %p62_p1 = scmp.ne.s32.totalorder %s843_s11, %s839_s10 }
   0xb   : > { %p63_p2 = scmp.eq.s32.totalorder %s855_s14, 0  ;;  %p68_p3 = scmp.ne.s32.totalorder %s839_s10, %s835_s9 }
   0xc   : > { %s1188_s17 = smov (%p38_p0, %s36_s17), 0  ;;  %p69_p5 = scmp.eq.s32.totalorder %s606_s15, 0 }
   0xd   : > { %p919_p4 = por %p63_p2, %p62_p1  ;;  %s50_s20 = ssub.s32 %s851_s13, %s1188_s17 }
   0xe   : > { %p128_p6 = scmp.eq.s32.totalorder %s606_s15, 1  ;;  %p53_p7 = scmp.eq.s32.totalorder %s50_s20, 0 }
   0xf   : > { %p925_p8 = por %p69_p5, %p68_p3  ;;  %p134_p10 = scmp.eq.s32.totalorder %s607_s16, 1 }
  0x10   : > { %p929_p9 = por %p128_p6, %p62_p1  ;;  %p649_p13 = scmp.lt.s32.totalorder %s855_s14, 2 }
  0x11   : > { %s1164_s21 = scalar_select %p925_p8, 1, 0 }
  0x12   : > { %s1165_s22 = scalar_select %p929_p9, 1, 0 }
  0x13   : > { %s934_s23 = scalar_select %p53_p7, %s843_s11, %s55_s18  }
  0x14   : > { %p936_p11 = por %p134_p10, %p68_p3  ;;  %s943_s25 = sand.u32 1, %s843_s11  }
  0x15   : > { %s610_s26 = sshll.u32 %s943_s25, 3  ;;  %s626_s27 = sshll.u32 %s851_s13, 7 }
  0x16   : > { %s1166_s24 = scalar_select %p936_p11, 1, 0 }
  0x17   : > { %s950_s30 = scalar_lea.hbm %s1158_s0, %s626_s27  ;;  %s158_s3 = scalar_lea.vmem [#allocation4], %s610_s26 }
  0x18   : > { %s171_s4 = sshll.u32 %s158_s3, 4  ;;  %p956_p0 = pnand %p649_p13, %p919_p4  ;;  %s952_s4 = int_to_ptr.vmem [resolvable:$true] %s171_s4 }
  0x19   : > { %s155_s6 = scalar_lea.sflag [#allocation5], %s943_s25  ;;  %s709_s7 = scalar_lea.hbm %s950_s30, 128 }
  0x1a   : > { %p710_p3 = scmp.ne.s32.totalorder %s950_s30, %s709_s7  ;;  %p711_p5 = pneg %p956_p0 }
  0x1b   : > { %s714_s16 = scalar_lea.hbm %s1158_s0, 256  ;;  %p715_p4 = scmp.lt.u32.totalorder %s950_s30, %s1158_s0 }
  0x1c   : > { %p712_p6 = pnand %p711_p5, %p710_p3  ;;  %p716_p10 = scmp.lt.u32.totalorder %s714_s16, %s709_s7 }
  0x1d   : > { %p718_p12 = scmp.lt.u32.totalorder %s709_s7, %s950_s30 }
  0x1e   : > { %p713_p7 = pneg %p712_p6  ;;  %p717_p13 = por %p716_p10, %p715_p4 }
  0x20   : > { %p719_p1 = por %p718_p12, %p717_p13 }
  0x22   : > { %p720_p2 = pnand %p719_p1, %p713_p7 }
  0x24   : > { %723 = shalt.err (!%p720_p2)
}
  0x25   : > { %s724_s20 = scalar_lea.vmem %s952_s4, 128  ;;  %s857_s26 = smov [#allocation4]  }
  0x26   : > { %p725_p3 = scmp.ne.s32.totalorder %s952_s4, %s724_s20  ;;  %s729_s27 = sshll.u32 %s857_s26, 4  ;;  %s730_s27 = int_to_ptr.vmem [resolvable:$false] %s729_s27 }
  0x27   : > { %s731_s28 = scalar_lea.vmem %s730_s27, 256  ;;  %p732_p9 = scmp.lt.s32.totalorder %s952_s4, %s730_s27 }
  0x28   : > { %p727_p6 = pnand %p725_p3, %p711_p5  ;;  %p733_p4 = scmp.lt.s32.totalorder %s731_s28, %s724_s20 }
  0x2a   : > { %p728_p11 = pneg %p727_p6  ;;  %p734_p10 = por %p733_p4, %p732_p9 }
  0x2c   : > { %p735_p12 = pnand %p734_p10, %p728_p11 }
  0x2e   : > { %738 = shalt.err (!%p735_p12)
}
  0x2f   : > { %641 = dma.hbm_to_vmem [thread:$0]  (!%p956_p0), %s950_s30, 128, %s952_s4, %s155_s6  }
  0x30   : > { %p1168_p1 = scmp.lt.s32.totalorder %s855_s14, 3  ;;  %p1169_p2 = scmp.ge.s32.totalorder %s855_s14, 1 }
  0x31   : > { %s613_s3 = sshll.u32 %s943_s25, 1  ;;  %s627_s7 = sshll.u32 %s851_s13, 5 }
  0x32   : > { %p992_p7 = pnand %p1169_p2, %p1168_p1  ;;  %s1001_s16 = scalar_lea.hbm %s1159_s1, %s627_s7 }
  0x33   : > { %s182_s18 = scalar_lea.vmem [#allocation7], %s613_s3  ;;  %s179_s30 = scalar_lea.sflag [#allocation8], %s943_s25 }
  0x34   : > { %s1170_s29 = scalar_select %p992_p7, 1, 0 }
  0x35   : > { %s195_s19 = sshll.u32 %s182_s18, 4  ;;  %s739_s4 = scalar_lea.hbm %s1001_s16, 32  ;;  %s196_s19 = int_to_ptr.vmem [resolvable:$true] %s195_s19 }
  0x36   : > { %p740_p9 = scmp.ne.s32.totalorder %s1001_s16, %s739_s4  ;;  %s744_s26 = scalar_lea.hbm %s1159_s1, 64 }
  0x37   : > { %p745_p3 = scmp.lt.u32.totalorder %s1001_s16, %s1159_s1  ;;  %p746_p6 = scmp.lt.u32.totalorder %s744_s26, %s739_s4 }
  0x38   : > { %p742_p11 = pnand %p740_p9, %p711_p5  ;;  %p748_p10 = scmp.lt.u32.totalorder %s739_s4, %s1001_s16 }
  0x39   : > { %p747_p4 = por %p746_p6, %p745_p3 }
  0x3a   : > { %p743_p13 = pneg %p742_p11 }
  0x3b   : > { %p749_p12 = por %p748_p10, %p747_p4 }
  0x3d   : > { %p750_p1 = pnand %p749_p12, %p743_p13 }
  0x3f   : > { %753 = shalt.err (!%p750_p1)
}
  0x40   : > { %s754_s25 = scalar_lea.vmem %s196_s19, 32  ;;  %s858_s3 = smov [#allocation7]  }
  0x41   : > { %p755_p2 = scmp.ne.s32.totalorder %s196_s19, %s754_s25  ;;  %s759_s7 = sshll.u32 %s858_s3, 4  ;;  %s760_s7 = int_to_ptr.vmem [resolvable:$false] %s759_s7 }
  0x42   : > { %s761_s8 = scalar_lea.vmem %s760_s7, 64  ;;  %p762_p8 = scmp.lt.s32.totalorder %s196_s19, %s760_s7 }
  0x43   : > { %p757_p9 = pnand %p755_p2, %p711_p5  ;;  %p763_p7 = scmp.lt.s32.totalorder %s761_s8, %s754_s25 }
  0x45   : > { %p758_p11 = pneg %p757_p9  ;;  %p764_p3 = por %p763_p7, %p762_p8 }
  0x47   : > { %p765_p6 = pnand %p764_p3, %p758_p11 }
  0x49   : > { %768 = shalt.err (!%p765_p6)
}
  0x4a   : > { %644 = dma.hbm_to_vmem [thread:$0]  (!%p956_p0), %s1001_s16, 32, %s196_s19, %s179_s30  }
  0x4b   : > { %p1171_p13 = scmp.ne.s32.totalorder %s1170_s29, 0 }
  0x4c   : > { %s1026_s15 = sand.u32 (!%p1171_p13), 1, %s839_s10   ;;  %p1172_p8 = scmp.ne.s32.totalorder (!%p1171_p13), %s1164_s21, 0 }
  0x4d   : > { %204 = sbr.rel (%p1171_p13) target bundleno = 401 (0x191), region = 28  ;;  %s617_s18 = sshll.u32 (!%p1171_p13), %s1026_s15, 3 }
  0x4e   : > { %s207_s4 = scalar_lea.sflag (!%p1171_p13), [#allocation5], %s1026_s15  ;;  %s210_s6 = scalar_lea.vmem (!%p1171_p13), [#allocation4], %s617_s18 }
  0x54   : > { %822 = dma.done.wait (%p1172_p8), %s207_s4, 128  }
  0x55   : > { %824 = vsyncadd (%p1172_p8), %s207_s4, 4294967168  ;;  %s618_s5 = sshll.u32 %s1026_s15, 1  ;;  %s216_s29 = scalar_lea.sflag [#allocation8], %s1026_s15 }
  0x56   : > { %s219_s16 = scalar_lea.vmem [#allocation7], %s618_s5 }
  0x57   : > { %826 = dma.done.wait (%p1172_p8), %s216_s29, 32  }
  0x58   : > { %828 = vsyncadd (%p1172_p8), %s216_s29, 4294967264  ;;  %v257_v0 = vlaneseq  ;;  %v859_v2 = vmov 0.0   ;;  %vm292_vm1 = vcmask 1043456   ;;  %v263_v4 = vld [vmem:[%s210_s6] sm:$0xff]  ;;  %v264_v5 = vld [vmem:[%s219_s16] sm:$0x3] }
  0x59   : > { %v860_v7 = vmov 1966171168   ;;  %vm275_vm2 = vcmp.ne.s32.totalorder %v264_v5, 255  ;;  %v290_v10 = vcombine.high %v263_v4, %v263_v4  ;;  %v293_v11 = vsel %vm292_vm1, %v263_v4, -inf  ;;  %s623_s21 = sshll.u32 %s847_s12, 7  ;;  %s244_s30 = scalar_lea.vmem [#allocation9], %s617_s18 }
  0x5a   : > { %vm1042_vm0 = vcmp.lt.s32.totalorder %v257_v0, 256  ;;  %v1050_v3 = vshrl.u32 %v257_v0, 7  ;;  %v374_v8 = vunpack.c.l.s4 %v860_v7  ;;  %v861_v12 = vmov 0   ;;  %s494_s20 = sshll.u32 %s244_s30, 4  ;;  %s1109_s25 = scalar_lea.hbm %s1160_s2, %s623_s21  ;;  %s1111_s20 = int_to_ptr.vmem [resolvable:$true] %s494_s20 }
  0x5b   : > { %261 = vst.msk [vmem:[#allocation2] sm:$0x3] %vm1042_vm0, %v859_v2  ;;  %262 = vst.msk [vmem:[#allocation3] sm:$0x3] %vm1042_vm0, %v859_v2  ;;  %v276_v13 = vsel %vm275_vm2, 1, %v861_v12  ;;  %v294_v14 = vrot.slane %v293_v11, 4 }
  0x5c   : > { %v1053_v6 = vsub.s32 0, %v1050_v3  ;;  %v1056_v9 = vsub.s32 1, %v1050_v3  ;;  %v300_v17 = vsel %vm292_vm1, %v290_v10, -inf  ;;  %v375_v20 = vunpack.c.0.s8 %v374_v8  ;;  %s479_s12 = scalar_lea.sflag [#allocation6], %s1026_s15  ;;  %s769_s3 = scalar_lea.vmem %s1111_s20, 128 }
  0x5d   : > { %v295_v18 = vmax.f32 %v293_v11, %v294_v14  ;;  %v301_v19 = vrot.slane %v300_v17, 4  ;;  %vm434_vm7 = vcmask 1040384   ;;  %vm472_vm8 = vcmp.eq.s32.totalorder %v1050_v3, 1  ;;  %p770_p0 = scmp.ne.s32.totalorder %s1111_s20, %s769_s3  ;;  %p1179_p5 = scmp.ne.s32.totalorder %s1165_s22, 0 }
  0x5e   : > { %v280_v15 = vrot.slane %v276_v13, %v1053_v6  ;;  %v284_v16 = vrot.slane %v276_v13, %v1056_v9  ;;  %v1075_v29 = vsub.s32 %v375_v20, %v1050_v3  ;;  %v342_v43 = vrot.slane %v264_v5, %v1053_v6  ;;  %s862_s7 = smov [#allocation9]  }
  0x5f   : > { %v296_v23 = vrot.slane %v295_v18, 2  ;;  %v302_v24 = vmax.f32 %v300_v17, %v301_v19  ;;  %v346_v44 = vrot.slane %v264_v5, %v1056_v9  ;;  %vm471_vm9 = vcmp.eq.s32.totalorder %v1050_v3, 0  ;;  %p771_p7 = pnand %p770_p0, %p1179_p5  ;;  %s773_s8 = sshll.u32 %s862_s7, 4  ;;  %s774_s8 = int_to_ptr.vmem [resolvable:$false] %s773_s8 }
  0x60   : > { %vm1062_vm3 = vcmp.ne.s32.totalorder %v280_v15, 0  ;;  %vm1066_vm4 = vcmp.ne.s32.totalorder %v284_v16, 0  ;;  %vm347_vm5 = vcmp.eq.s32.totalorder %v1050_v3, %v342_v43  ;;  %s775_s18 = scalar_lea.vmem %s774_s8, 256  ;;  %p776_p10 = scmp.lt.s32.totalorder %s1111_s20, %s774_s8 }
  0x61   : > { %v620_v25 = vsel %vm1062_vm3, 1.0, %v859_v2  ;;  %v621_v26 = vsel %vm1066_vm4, 1.0, %v859_v2  ;;  %v297_v27 = vmax.f32 %v295_v18, %v296_v23  ;;  %v303_v28 = vrot.slane %v302_v24, 2  ;;  %p772_p4 = pneg %p771_p7  ;;  %p777_p12 = scmp.lt.s32.totalorder %s775_s18, %s769_s3 }
  0x62   : > { %v401_v30 = vcombine.low %v620_v25, %v621_v26  ;;  %v394_v34 = vld [vmem:[#allocation3] sm:$0x3]  ;;  %vm348_vm6 = vcmp.eq.s32.totalorder %v1050_v3, %v346_v44  ;;  %v349_v45 = vsel %vm347_vm5, %v263_v4, 0.0 }
  0x63   : > { %v298_v31 = vrot.slane %v297_v27, 1  ;;  %v304_v32 = vmax.f32 %v302_v24, %v303_v28  ;;  %v350_v49 = vsel %vm348_vm6, %v290_v10, 0.0  ;;  %v351_v51 = vsel %vm292_vm1, %v349_v45, 0.0  ;;  %p778_p1 = por %p777_p12, %p776_p10 }
  0x64   : > { %v408_v33 = vrot.slane %v401_v30, %v1075_v29  ;;  %v358_v55 = vsel %vm292_vm1, %v350_v49, 0.0  ;;  %v352_v56 = vrot.slane %v351_v51, 4 }
  0x65   : > { %v299_v35 = vmax.f32 %v297_v27, %v298_v31  ;;  %v305_v36 = vrot.slane %v304_v32, 1  ;;  %v359_v59 = vrot.slane %v358_v55, 4  ;;  %p779_p2 = pnand %p778_p1, %p772_p4 }
  0x66   : > { %v415_v37 = vrot.slane %v408_v33, %v1075_v29  ;;  %v353_v62 = vadd.f32 %v352_v56, %v351_v51 }
  0x67   : > { %v306_v38 = vmax.f32 %v304_v32, %v305_v36  ;;  %v360_v2 = vadd.f32 %v359_v59, %v358_v55  ;;  %v367_v32 = vld [vmem:[#allocation2] sm:$0x3] }
  0x68   : > { %v417_v39 = vadd.f32 %v415_v37, %v394_v34  ;;  %v354_v7 = vrot.slane %v353_v62, 2 }
  0x69   : > { %v309_v40 = vcombine.low %v299_v35, %v306_v38  ;;  %v361_v10 = vrot.slane %v360_v2, 2 }
  0x6a   : > { %418 = vst.msk [vmem:[#allocation3] sm:$0x3] %vm1042_vm0, %v417_v39  ;;  %v355_v11 = vadd.f32 %v354_v7, %v353_v62 }
  0x6b   : > { %v311_v41 = vsub.f32 %v263_v4, %v309_v40  ;;  %v362_v12 = vadd.f32 %v361_v10, %v360_v2 }
  0x6c   : > { %v356_v13 = vrot.slane %v355_v11, 1 }
  0x6d   : > { %v312_v42 = vmul.f32 1.442695, %v311_v41  ;;  %v363_v14 = vrot.slane %v362_v12, 1 }
  0x6e   : > { %v357_v17 = vadd.f32 %v356_v13, %v355_v11 }
  0x6f   : > { %703 = vpow2.f32 %v312_v42  ;;  %v364_v23 = vadd.f32 %v363_v14, %v362_v12 }
  0x79   : > { %v704_v46 = vpop.eup %703 }
  0x7a   : > { %v315_v47 = vcombine.high %v704_v46, %v704_v46  ;;  %v317_v48 = vsel %vm292_vm1, %v704_v46, 0.0 }
  0x7b   : > { %v318_v50 = vrot.slane %v317_v48, 4 }
  0x7c   : > { %v324_v52 = vsel %vm292_vm1, %v315_v47, 0.0 }
  0x7d   : > { %v319_v53 = vadd.f32 %v318_v50, %v317_v48  ;;  %v325_v54 = vrot.slane %v324_v52, 4 }
  0x7f   : > { %v320_v57 = vrot.slane %v319_v53, 2  ;;  %v326_v58 = vadd.f32 %v325_v54, %v324_v52 }
  0x81   : > { %v321_v60 = vadd.f32 %v320_v57, %v319_v53  ;;  %v327_v61 = vrot.slane %v326_v58, 2 }
  0x83   : > { %v322_v63 = vrot.slane %v321_v60, 1  ;;  %v328_v0 = vadd.f32 %v327_v61, %v326_v58 }
  0x85   : > { %v323_v4 = vadd.f32 %v322_v63, %v321_v60  ;;  %v329_v5 = vrot.slane %v328_v0, 1 }
  0x87   : > { %v330_v8 = vadd.f32 %v329_v5, %v328_v0  ;;  %705 = vlog2.f32 %v323_v4 }
  0x89   : > { %707 = vlog2.f32 %v330_v8 }
  0x91   : > { %v706_v15 = vpop.eup %705 }
  0x92   : > { %v332_v16 = vmul.f32 0.6931472, %v706_v15 }
  0x93   : > { %v708_v18 = vpop.eup %707 }
  0x94   : > { %v334_v19 = vmul.f32 0.6931472, %v708_v18  ;;  %v335_v20 = vadd.f32 %v332_v16, %v299_v35  ;;  %v447_v35 = vld [vmem:[#allocation3] sm:$0x3] }
  0x95   : > { %v452_v36 = vrot.slane %v447_v35, %v1053_v6  ;;  %v456_v37 = vrot.slane %v447_v35, %v1056_v9 }
  0x96   : > { %v336_v24 = vadd.f32 %v334_v19, %v306_v38  ;;  %v365_v25 = vsub.f32 %v335_v20, %v357_v17 }
  0x97   : > { %v459_v41 = vsel %vm434_vm7, %v452_v36, 0.0  ;;  %v460_v42 = vsel %vm434_vm7, %v456_v37, 0.0 }
  0x98   : > { %v366_v26 = vsub.f32 %v336_v24, %v364_v23  ;;  %v368_v27 = vsel %vm1062_vm3, %v365_v25, 0.0  ;;  %v461_v43 = vadd.f32 %v460_v42, %v459_v41 }
  0x9a   : > { %v369_v28 = vsel %vm1066_vm4, %v366_v26, 0.0 }
  0x9b   : > { %v372_v30 = vcombine.low %v368_v27, %v369_v28 }
  0x9d   : > { %v379_v31 = vrot.slane %v372_v30, %v1075_v29 }
  0x9f   : > { %v386_v33 = vrot.slane %v379_v31, %v1075_v29 }
  0xa1   : > { %v388_v34 = vadd.f32 %v386_v33, %v367_v32 }
  0xa3   : > { %393 = vst.msk [vmem:[#allocation2] sm:$0x3] %vm1042_vm0, %v388_v34 }
  0xaa   : > { %v422_v21 = vld [vmem:[#allocation2] sm:$0x3] }
  0xab   : > { %v427_v22 = vrot.slane %v422_v21, %v1053_v6  ;;  %v431_v38 = vrot.slane %v422_v21, %v1056_v9 }
  0xad   : > { %v435_v39 = vsel %vm434_vm7, %v427_v22, 0.0  ;;  %v436_v40 = vsel %vm434_vm7, %v431_v38, 0.0 }
  0xae   : > { %v437_v29 = vadd.f32 %v436_v40, %v435_v39 }
  0xb0   : > { %438 = vadd.xlane.f32.xlu0 %v437_v29 }
  0xb4   : > { %462 = vadd.xlane.f32.xlu0 %v461_v43 }
 0x13d   : > { %v439_v1 = vpop.xlane.xlu0 %438 }
 0x13e   : > { %v440_v44 = vrot.slane %v439_v1, 4 }
 0x140   : > { %v441_v45 = vadd.f32 %v440_v44, %v439_v1 }
 0x141   : > { %v463_v46 = vpop.xlane.xlu0 %462 }
 0x142   : > { %v442_v47 = vrot.slane %v441_v45, 2  ;;  %v464_v48 = vrot.slane %v463_v46, 4 }
 0x144   : > { %v465_v49 = vadd.f32 %v464_v48, %v463_v46  ;;  %v443_v6 = vadd.f32 %v442_v47, %v441_v45 }
 0x146   : > { %v466_v50 = vrot.slane %v465_v49, 2  ;;  %v444_v9 = vrot.slane %v443_v6, 1 }
 0x148   : > { %v467_v51 = vadd.f32 %v466_v50, %v465_v49  ;;  %v445_v52 = vadd.f32 %v444_v9, %v443_v6 }
 0x14a   : > { %628 = vpush %v445_v52  ;;  %v468_v53 = vrot.slane %v467_v51, 1 }
 0x14c   : > { %v469_v54 = vadd.f32 %v468_v53, %v467_v51 }
 0x14e   : > { %630 = vpush %v469_v54 }
 0x17b   : > { %s629_s19 = spop %628 }
 0x17c   : > { %v475_v56 = vstv %s629_s19 }
 0x17f   : > { %s631_s26 = spop %630 }
 0x180   : > { %v473_v55 = vstv %s631_s26 }
 0x181   : > { %v474_v57 = vsel %vm472_vm8, %v473_v55, 0.0 }
 0x182   : > { %v476_v58 = vsel %vm471_vm9, %v475_v56, %v474_v57 }
 0x183   : > { %477 = vst [vmem:[%s244_s30] sm:$0xff] %v476_v58 }
 0x184   : > { %782 = shalt.err (!%p779_p2)
}
 0x185   : > { %s783_s15 = scalar_lea.hbm %s1109_s25, 128  ;;  %s787_s5 = scalar_lea.hbm %s1160_s2, 256 }
 0x186   : > { %p784_p9 = scmp.ne.s32.totalorder %s1109_s25, %s783_s15  ;;  %p788_p6 = scmp.lt.u32.totalorder %s1109_s25, %s1160_s2 }
 0x187   : > { %p789_p13 = scmp.lt.u32.totalorder %s787_s5, %s783_s15  ;;  %p791_p0 = scmp.lt.u32.totalorder %s783_s15, %s1109_s25 }
 0x188   : > { %p785_p11 = pnand %p784_p9, %p1179_p5 }
 0x189   : > { %p790_p8 = por %p789_p13, %p788_p6 }
 0x18a   : > { %p786_p3 = pneg %p785_p11 }
 0x18b   : > { %p792_p7 = por %p791_p0, %p790_p8 }
 0x18d   : > { %p793_p4 = pnand %p792_p7, %p786_p3 }
 0x18f   : > { %796 = shalt.err (!%p793_p4)
}
 0x190   : > { %636 = dma.vmem_to_hbm [thread:$0]  (%p1179_p5), %s1111_s20, 128, %s1109_s25, %s479_s12  }
 0x191 PF: > { %s506_s21 = sand.u32 1, %s835_s9   ;;  %p1180_p10 = scmp.ne.s32.totalorder %s1166_s24, 0 }
 0x192   : > { %p1181_p12 = scmp.ge.s32.totalorder %s855_s14, 2  ;;  %s507_s19 = scalar_lea.sflag [#allocation6], %s506_s21 }
 0x194   : > { %p646_p1 = pnand %p1181_p12, %p1180_p10 }
 0x196   : > { %830 = dma.done.wait (!%p646_p1), %s507_s19, 128  }
 0x197   : > { %832 = vsyncadd (!%p646_p1), %s507_s19, 4294967168  ;;  %s21_s14 = sadd.s32 1, %s855_s14   ;;  %s1182_s9 = smov %s839_s10 }
 0x198   : > { %p18_p2 = scmp.ge.s32.totalorder %s21_s14, 4   ;;  %s1183_s10 = smov %s843_s11 }
 0x199   : > { %s1184_s11 = smov %s934_s23  ;;  %s1185_s12 = smov %s851_s13 }
 0x19a   : > { %s1186_s13 = smov %s1188_s17  ;;  %20 = sbr.rel (!%p18_p2) target bundleno = 8 (0x8), region = 94 }
 0x1a1   :  { %512 = vsyncpa [#allocation5], 1 }
 0x1a2   :  { %514 = vsyncpa [#allocation5 + $0x1], 1 }
 0x1a3   :  { %515 = vsyncpa [#allocation8], 1 }
 0x1a4   :  { %517 = vsyncpa [#allocation8 + $0x1], 1 }
 0x1a5   :  { %518 = vsyncpa [#allocation6], 1 }
 0x1a6   :  { %520 = vsyncpa [#allocation6 + $0x1], 1 }

</bundles_post_ra>
